<compile_context>
chip_gen: v5e
topology: v5e:2x2
jax: 0.10.0
libtpu: 0.0.40
codegen_flags: <defaults>
</compile_context>

<pallas_src>
import functools

import jax
import jax.numpy as jnp
from jax.experimental import pallas as pl
from jax.experimental.pallas import tpu as pltpu


def _cdiv(a, b):
    return -(-a // b)


def _out_conv1x1_kernel(w_ref, b_ref, x_ref, o_ref, *, cin, cout, n_blk, t_r, chunk):
    # w_ref: SMEM (cout*cin,) f32, row-major over (cout, cin)
    # b_ref: SMEM (cout,)     f32
    # x_ref: VMEM (n_blk, cin,  t_r, 128) input tile
    # o_ref: VMEM (n_blk, cout, t_r, 128) output tile
    w = [w_ref[i] for i in range(cout * cin)]          # resident scalars (sregs)
    b = [b_ref[i] for i in range(cout)]

    def do_rows(r0, size):
        for n in range(n_blk):
            for co in range(cout):
                acc = None
                for ci in range(cin):
                    # per-use load of a dense (size, 128) chunk -> low vreg pressure
                    xc = x_ref[n, ci, pl.ds(r0, size), :].astype(jnp.float32)
                    term = w[co * cin + ci] * xc
                    acc = term if acc is None else acc + term
                acc = acc + b[co]
                o_ref[n, co, pl.ds(r0, size), :] = acc.astype(o_ref.dtype)

    n_full = t_r // chunk
    tail = t_r - n_full * chunk

    if n_full > 0:
        @pl.loop(0, n_full)
        def _(i):
            do_rows(pl.multiple_of(i * chunk, chunk), chunk)

    if tail > 0:
        do_rows(n_full * chunk, tail)


def out_conv1x1(x_nchw, weight, bias, *,
                max_rows_per_tile=1024,     # 1024 rows * 128 lanes = 131072 px / step
                target_pixels=131072,
                chunk_rows=64):
    """1x1 conv, stride 1, no padding (PyTorch Conv2d semantics).

    x_nchw: (N, Cin, H, W);  weight: (Cout, Cin, 1, 1);  bias: (Cout,)
    returns (N, Cout, H, W) in the input dtype (accumulation in f32).
    """
    N, Cin, H, W = x_nchw.shape
    Cout = weight.shape[0]
    HW = H * W

    # Spatial axis as (rows, 128): lanes fully dense, rows on sublanes.
    hw_pad = _cdiv(HW, 128) * 128
    rows = hw_pad // 128

    x_rows = x_nchw.reshape(N, Cin, HW)                  # free reshape, stays NCHW
    if hw_pad != HW:
        # Only needed when H*W is not lane-aligned (at most 127 extra columns).
        x_rows = jnp.pad(x_rows, ((0, 0), (0, 0), (0, hw_pad - HW)))
    x4 = x_rows.reshape(N, Cin, rows, 128)

    # Row tile: whole image if it fits, else a large multiple-of-8 tile
    # (ragged last block is handled by Pallas, no wrapper padding to tile size).
    t_r = rows if rows <= max_rows_per_tile else max_rows_per_tile

    # Batch several images per grid step when one image is tiny, so each step
    # still moves enough bytes to hide the ~0.35us per-step overhead.
    n_blk = 1
    if t_r == rows:
        per_img_px = rows * 128
        max_n = max(1, target_pixels // per_img_px)
        for cand in range(min(max_n, N), 0, -1):
            if N % cand == 0:
                n_blk = cand
                break
        if n_blk == N and N > 1:
            # keep >= 2 parallel grid blocks so dual-TC chips (v7x) use both cores
            n_blk = next(d for d in range(N // 2, 0, -1) if N % d == 0)

    grid_n = N // n_blk
    grid_r = _cdiv(rows, t_r)
    if grid_n * grid_r < 2 and rows >= 16:
        # split the spatial axis so dual-TC chips still get >= 2 parallel blocks
        t_r = _cdiv(_cdiv(rows, 2), 8) * 8               # keep multiple of 8
        grid_r = _cdiv(rows, t_r)

    chunk = min(chunk_rows, t_r)

    # Weight/bias packed once as flat f32 arrays, resident in SMEM.
    w_flat = weight.reshape(Cout * Cin).astype(jnp.float32)
    b_flat = bias.reshape(Cout).astype(jnp.float32)

    kernel = functools.partial(
        _out_conv1x1_kernel,
        cin=Cin, cout=Cout, n_blk=n_blk, t_r=t_r, chunk=chunk)

    y4 = pl.pallas_call(
        kernel,
        out_shape=jax.ShapeDtypeStruct((N, Cout, rows, 128), x_nchw.dtype),
        grid=(grid_n, grid_r),
        in_specs=[
            pl.BlockSpec(memory_space=pltpu.MemorySpace.SMEM),   # weight (resident)
            pl.BlockSpec(memory_space=pltpu.MemorySpace.SMEM),   # bias   (resident)
            pl.BlockSpec((n_blk, Cin, t_r, 128), lambda nb, rb: (nb, 0, rb, 0)),
        ],
        out_specs=pl.BlockSpec((n_blk, Cout, t_r, 128), lambda nb, rb: (nb, 0, rb, 0)),
        compiler_params=pltpu.CompilerParams(
            dimension_semantics=("parallel", "parallel"),
        ),
    )(w_flat, b_flat, x4)

    y = y4.reshape(N, Cout, hw_pad)
    if hw_pad != HW:
        y = y[:, :, :HW]
    return y.reshape(N, Cout, H, W)


def reference_conv1x1(x_nchw, weight, bias):
    y = jnp.einsum(
        "nchw,oc->nohw",
        x_nchw.astype(jnp.float32),
        weight.reshape(weight.shape[0], -1).astype(jnp.float32))
    return y + bias.astype(jnp.float32)[None, :, None, None]


if __name__ == "__main__":
    key = jax.random.PRNGKey(0)
    k_x, k_w, k_b, k_x2, k_x3 = jax.random.split(key, 5)

    # Small shapes consistent with the module: Out(in_channels=4, out_channels=3)
    N, Cin, H, W = 2, 4, 16, 16
    Cout = 3

    # deterministic param init (PyTorch-style uniform bound 1/sqrt(fan_in))
    fan_in = Cin * 1 * 1
    bound = 1.0 / jnp.sqrt(fan_in)
    weight = jax.random.uniform(k_w, (Cout, Cin, 1, 1), jnp.float32, -bound, bound)
    bias = jax.random.uniform(k_b, (Cout,), jnp.float32, -bound, bound)

    # 1) main test (lane-aligned spatial size, batched grid step)
    x = jax.random.normal(k_x, (N, Cin, H, W), dtype=jnp.float32)
    y = out_conv1x1(x, weight, bias)
    jax.block_until_ready(y)
    assert y.shape == (N, Cout, H, W)
    assert jnp.allclose(y, reference_conv1x1(x, weight, bias), atol=1e-5, rtol=1e-5)

    # 2) odd spatial size (H*W not a multiple of 128) -> exercises the 128-pad path
    x2 = jax.random.normal(k_x2, (1, Cin, 10, 7), dtype=jnp.float32)
    y2 = out_conv1x1(x2, weight, bias)
    jax.block_until_ready(y2)
    assert y2.shape == (1, Cout, 10, 7)
    assert jnp.allclose(y2, reference_conv1x1(x2, weight, bias), atol=1e-5, rtol=1e-5)

    # 3) larger image -> exercises chunked pl.loop + 2-way spatial split (v7x path)
    x3 = jax.random.normal(k_x3, (1, Cin, 128, 128), dtype=jnp.float32)
    y3 = out_conv1x1(x3, weight, bias)
    jax.block_until_ready(y3)
    assert y3.shape == (1, Cout, 128, 128)
    assert jnp.allclose(y3, reference_conv1x1(x3, weight, bias), atol=1e-5, rtol=1e-5)

    # 4) bf16 I/O path (f32 accumulate in-kernel, bf16 in/out halves HBM traffic)
    x4 = x.astype(jnp.bfloat16)
    y4 = out_conv1x1(x4, weight, bias)
    jax.block_until_ready(y4)
    assert y4.dtype == jnp.bfloat16
    assert jnp.allclose(y4.astype(jnp.float32),
                        reference_conv1x1(x4.astype(jnp.float32), weight, bias),
                        atol=3e-2, rtol=3e-2)

    print("KERNEL_OK")
</pallas_src>

<mosaic_0001>
module attributes {stable_mosaic.version = 11 : i64} {
  func.func @_out_conv1x1_kernel(%arg0: i32, %arg1: i32, %arg2: memref<12xf32, #tpu.memory_space<smem>>, %arg3: memref<3xf32, #tpu.memory_space<smem>>, %arg4: memref<1x4x2x128xf32, #tpu.memory_space<vmem>>, %arg5: memref<1x3x2x128xf32, #tpu.memory_space<vmem>>) attributes {dimension_semantics = [#tpu.dimension_semantics<parallel>, #tpu.dimension_semantics<parallel>], iteration_bounds = array<i64: 2, 1>, scalar_prefetch = 0 : i64, scratch_operands = 0 : i64, tpu.core_type = #tpu.core_type<tc>, window_params = [{transform_indices = @transform_0, window_bounds = array<i64: 12>}, {transform_indices = @transform_1, window_bounds = array<i64: 3>}, {transform_indices = @transform_2, window_bounds = array<i64: 1, 4, 2, 128>}, {transform_indices = @transform_3, window_bounds = array<i64: 1, 3, 2, 128>}]} {
    %c0 = arith.constant 0 : index
    %0 = memref.load %arg2[%c0] : memref<12xf32, #tpu.memory_space<smem>>
    %c1 = arith.constant 1 : index
    %1 = memref.load %arg2[%c1] : memref<12xf32, #tpu.memory_space<smem>>
    %c2 = arith.constant 2 : index
    %2 = memref.load %arg2[%c2] : memref<12xf32, #tpu.memory_space<smem>>
    %c3 = arith.constant 3 : index
    %3 = memref.load %arg2[%c3] : memref<12xf32, #tpu.memory_space<smem>>
    %c4 = arith.constant 4 : index
    %4 = memref.load %arg2[%c4] : memref<12xf32, #tpu.memory_space<smem>>
    %c5 = arith.constant 5 : index
    %5 = memref.load %arg2[%c5] : memref<12xf32, #tpu.memory_space<smem>>
    %c6 = arith.constant 6 : index
    %6 = memref.load %arg2[%c6] : memref<12xf32, #tpu.memory_space<smem>>
    %c7 = arith.constant 7 : index
    %7 = memref.load %arg2[%c7] : memref<12xf32, #tpu.memory_space<smem>>
    %c8 = arith.constant 8 : index
    %8 = memref.load %arg2[%c8] : memref<12xf32, #tpu.memory_space<smem>>
    %c9 = arith.constant 9 : index
    %9 = memref.load %arg2[%c9] : memref<12xf32, #tpu.memory_space<smem>>
    %c10 = arith.constant 10 : index
    %10 = memref.load %arg2[%c10] : memref<12xf32, #tpu.memory_space<smem>>
    %c11 = arith.constant 11 : index
    %11 = memref.load %arg2[%c11] : memref<12xf32, #tpu.memory_space<smem>>
    %c0_0 = arith.constant 0 : index
    %12 = memref.load %arg3[%c0_0] : memref<3xf32, #tpu.memory_space<smem>>
    %c1_1 = arith.constant 1 : index
    %13 = memref.load %arg3[%c1_1] : memref<3xf32, #tpu.memory_space<smem>>
    %c2_2 = arith.constant 2 : index
    %14 = memref.load %arg3[%c2_2] : memref<3xf32, #tpu.memory_space<smem>>
    %c0_i32 = arith.constant 0 : i32
    %c1_i32 = arith.constant 1 : i32
    %15 = arith.muli %c0_i32, %c1_i32 : i32
    %c0_i32_3 = arith.constant 0 : i32
    %16 = arith.addi %c0_i32_3, %15 : i32
    %c2_i32 = arith.constant 2 : i32
    %17 = arith.muli %16, %c2_i32 : i32
    %18 = tpu.assume_multiple %17, 2 : i32
    %c0_4 = arith.constant 0 : index
    %c0_5 = arith.constant 0 : index
    %19 = arith.index_cast %18 : i32 to index
    %c0_6 = arith.constant 0 : index
    %20 = vector.load %arg4[%c0_4, %c0_5, %19, %c0_6] : memref<1x4x2x128xf32, #tpu.memory_space<vmem>>, vector<1x1x2x128xf32>
    %21 = vector.shape_cast %20 : vector<1x1x2x128xf32> to vector<2x128xf32>
    %22 = vector.broadcast %0 : f32 to vector<2x128xf32>
    %23 = arith.mulf %22, %21 : vector<2x128xf32>
    %c0_7 = arith.constant 0 : index
    %c1_8 = arith.constant 1 : index
    %24 = arith.index_cast %18 : i32 to index
    %c0_9 = arith.constant 0 : index
    %25 = vector.load %arg4[%c0_7, %c1_8, %24, %c0_9] : memref<1x4x2x128xf32, #tpu.memory_space<vmem>>, vector<1x1x2x128xf32>
    %26 = vector.shape_cast %25 : vector<1x1x2x128xf32> to vector<2x128xf32>
    %27 = vector.broadcast %1 : f32 to vector<2x128xf32>
    %28 = arith.mulf %27, %26 : vector<2x128xf32>
    %29 = arith.addf %23, %28 : vector<2x128xf32>
    %c0_10 = arith.constant 0 : index
    %c2_11 = arith.constant 2 : index
    %30 = arith.index_cast %18 : i32 to index
    %c0_12 = arith.constant 0 : index
    %31 = vector.load %arg4[%c0_10, %c2_11, %30, %c0_12] : memref<1x4x2x128xf32, #tpu.memory_space<vmem>>, vector<1x1x2x128xf32>
    %32 = vector.shape_cast %31 : vector<1x1x2x128xf32> to vector<2x128xf32>
    %33 = vector.broadcast %2 : f32 to vector<2x128xf32>
    %34 = arith.mulf %33, %32 : vector<2x128xf32>
    %35 = arith.addf %29, %34 : vector<2x128xf32>
    %c0_13 = arith.constant 0 : index
    %c3_14 = arith.constant 3 : index
    %36 = arith.index_cast %18 : i32 to index
    %c0_15 = arith.constant 0 : index
    %37 = vector.load %arg4[%c0_13, %c3_14, %36, %c0_15] : memref<1x4x2x128xf32, #tpu.memory_space<vmem>>, vector<1x1x2x128xf32>
    %38 = vector.shape_cast %37 : vector<1x1x2x128xf32> to vector<2x128xf32>
    %39 = vector.broadcast %3 : f32 to vector<2x128xf32>
    %40 = arith.mulf %39, %38 : vector<2x128xf32>
    %41 = arith.addf %35, %40 : vector<2x128xf32>
    %42 = vector.broadcast %12 : f32 to vector<2x128xf32>
    %43 = arith.addf %41, %42 : vector<2x128xf32>
    %c0_16 = arith.constant 0 : index
    %c0_17 = arith.constant 0 : index
    %44 = arith.index_cast %18 : i32 to index
    %c0_18 = arith.constant 0 : index
    %45 = vector.load %arg5[%c0_16, %c0_17, %44, %c0_18] : memref<1x3x2x128xf32, #tpu.memory_space<vmem>>, vector<1x1x2x128xf32>
    %46 = vector.shape_cast %45 : vector<1x1x2x128xf32> to vector<2x128xf32>
    %47 = vector.shape_cast %43 : vector<2x128xf32> to vector<1x1x2x128xf32>
    tpu.vector_store %arg5[%c0_16, %c0_17, %44, %c0_18], %47 {strides = array<i32>} : memref<1x3x2x128xf32, #tpu.memory_space<vmem>>, vector<1x1x2x128xf32>,
    %c0_19 = arith.constant 0 : index
    %c0_20 = arith.constant 0 : index
    %48 = arith.index_cast %18 : i32 to index
    %c0_21 = arith.constant 0 : index
    %49 = vector.load %arg4[%c0_19, %c0_20, %48, %c0_21] : memref<1x4x2x128xf32, #tpu.memory_space<vmem>>, vector<1x1x2x128xf32>
    %50 = vector.shape_cast %49 : vector<1x1x2x128xf32> to vector<2x128xf32>
    %51 = vector.broadcast %4 : f32 to vector<2x128xf32>
    %52 = arith.mulf %51, %50 : vector<2x128xf32>
    %c0_22 = arith.constant 0 : index
    %c1_23 = arith.constant 1 : index
    %53 = arith.index_cast %18 : i32 to index
    %c0_24 = arith.constant 0 : index
    %54 = vector.load %arg4[%c0_22, %c1_23, %53, %c0_24] : memref<1x4x2x128xf32, #tpu.memory_space<vmem>>, vector<1x1x2x128xf32>
    %55 = vector.shape_cast %54 : vector<1x1x2x128xf32> to vector<2x128xf32>
    %56 = vector.broadcast %5 : f32 to vector<2x128xf32>
    %57 = arith.mulf %56, %55 : vector<2x128xf32>
    %58 = arith.addf %52, %57 : vector<2x128xf32>
    %c0_25 = arith.constant 0 : index
    %c2_26 = arith.constant 2 : index
    %59 = arith.index_cast %18 : i32 to index
    %c0_27 = arith.constant 0 : index
    %60 = vector.load %arg4[%c0_25, %c2_26, %59, %c0_27] : memref<1x4x2x128xf32, #tpu.memory_space<vmem>>, vector<1x1x2x128xf32>
    %61 = vector.shape_cast %60 : vector<1x1x2x128xf32> to vector<2x128xf32>
    %62 = vector.broadcast %6 : f32 to vector<2x128xf32>
    %63 = arith.mulf %62, %61 : vector<2x128xf32>
    %64 = arith.addf %58, %63 : vector<2x128xf32>
    %c0_28 = arith.constant 0 : index
    %c3_29 = arith.constant 3 : index
    %65 = arith.index_cast %18 : i32 to index
    %c0_30 = arith.constant 0 : index
    %66 = vector.load %arg4[%c0_28, %c3_29, %65, %c0_30] : memref<1x4x2x128xf32, #tpu.memory_space<vmem>>, vector<1x1x2x128xf32>
    %67 = vector.shape_cast %66 : vector<1x1x2x128xf32> to vector<2x128xf32>
    %68 = vector.broadcast %7 : f32 to vector<2x128xf32>
    %69 = arith.mulf %68, %67 : vector<2x128xf32>
    %70 = arith.addf %64, %69 : vector<2x128xf32>
    %71 = vector.broadcast %13 : f32 to vector<2x128xf32>
    %72 = arith.addf %70, %71 : vector<2x128xf32>
    %c0_31 = arith.constant 0 : index
    %c1_32 = arith.constant 1 : index
    %73 = arith.index_cast %18 : i32 to index
    %c0_33 = arith.constant 0 : index
    %74 = vector.load %arg5[%c0_31, %c1_32, %73, %c0_33] : memref<1x3x2x128xf32, #tpu.memory_space<vmem>>, vector<1x1x2x128xf32>
    %75 = vector.shape_cast %74 : vector<1x1x2x128xf32> to vector<2x128xf32>
    %76 = vector.shape_cast %72 : vector<2x128xf32> to vector<1x1x2x128xf32>
    tpu.vector_store %arg5[%c0_31, %c1_32, %73, %c0_33], %76 {strides = array<i32>} : memref<1x3x2x128xf32, #tpu.memory_space<vmem>>, vector<1x1x2x128xf32>,
    %c0_34 = arith.constant 0 : index
    %c0_35 = arith.constant 0 : index
    %77 = arith.index_cast %18 : i32 to index
    %c0_36 = arith.constant 0 : index
    %78 = vector.load %arg4[%c0_34, %c0_35, %77, %c0_36] : memref<1x4x2x128xf32, #tpu.memory_space<vmem>>, vector<1x1x2x128xf32>
    %79 = vector.shape_cast %78 : vector<1x1x2x128xf32> to vector<2x128xf32>
    %80 = vector.broadcast %8 : f32 to vector<2x128xf32>
    %81 = arith.mulf %80, %79 : vector<2x128xf32>
    %c0_37 = arith.constant 0 : index
    %c1_38 = arith.constant 1 : index
    %82 = arith.index_cast %18 : i32 to index
    %c0_39 = arith.constant 0 : index
    %83 = vector.load %arg4[%c0_37, %c1_38, %82, %c0_39] : memref<1x4x2x128xf32, #tpu.memory_space<vmem>>, vector<1x1x2x128xf32>
    %84 = vector.shape_cast %83 : vector<1x1x2x128xf32> to vector<2x128xf32>
    %85 = vector.broadcast %9 : f32 to vector<2x128xf32>
    %86 = arith.mulf %85, %84 : vector<2x128xf32>
    %87 = arith.addf %81, %86 : vector<2x128xf32>
    %c0_40 = arith.constant 0 : index
    %c2_41 = arith.constant 2 : index
    %88 = arith.index_cast %18 : i32 to index
    %c0_42 = arith.constant 0 : index
    %89 = vector.load %arg4[%c0_40, %c2_41, %88, %c0_42] : memref<1x4x2x128xf32, #tpu.memory_space<vmem>>, vector<1x1x2x128xf32>
    %90 = vector.shape_cast %89 : vector<1x1x2x128xf32> to vector<2x128xf32>
    %91 = vector.broadcast %10 : f32 to vector<2x128xf32>
    %92 = arith.mulf %91, %90 : vector<2x128xf32>
    %93 = arith.addf %87, %92 : vector<2x128xf32>
    %c0_43 = arith.constant 0 : index
    %c3_44 = arith.constant 3 : index
    %94 = arith.index_cast %18 : i32 to index
    %c0_45 = arith.constant 0 : index
    %95 = vector.load %arg4[%c0_43, %c3_44, %94, %c0_45] : memref<1x4x2x128xf32, #tpu.memory_space<vmem>>, vector<1x1x2x128xf32>
    %96 = vector.shape_cast %95 : vector<1x1x2x128xf32> to vector<2x128xf32>
    %97 = vector.broadcast %11 : f32 to vector<2x128xf32>
    %98 = arith.mulf %97, %96 : vector<2x128xf32>
    %99 = arith.addf %93, %98 : vector<2x128xf32>
    %100 = vector.broadcast %14 : f32 to vector<2x128xf32>
    %101 = arith.addf %99, %100 : vector<2x128xf32>
    %c0_46 = arith.constant 0 : index
    %c2_47 = arith.constant 2 : index
    %102 = arith.index_cast %18 : i32 to index
    %c0_48 = arith.constant 0 : index
    %103 = vector.load %arg5[%c0_46, %c2_47, %102, %c0_48] : memref<1x3x2x128xf32, #tpu.memory_space<vmem>>, vector<1x1x2x128xf32>
    %104 = vector.shape_cast %103 : vector<1x1x2x128xf32> to vector<2x128xf32>
    %105 = vector.shape_cast %101 : vector<2x128xf32> to vector<1x1x2x128xf32>
    tpu.vector_store %arg5[%c0_46, %c2_47, %102, %c0_48], %105 {strides = array<i32>} : memref<1x3x2x128xf32, #tpu.memory_space<vmem>>, vector<1x1x2x128xf32>,
    %c1_i32_49 = arith.constant 1 : i32
    return
  }
  func.func @transform_0(%arg0: i32, %arg1: i32) -> i32 {
    %c0_i32 = arith.constant 0 : i32
    %c0_i32_0 = arith.constant 0 : i32
    return %c0_i32 : i32
  }
  func.func @transform_1(%arg0: i32, %arg1: i32) -> i32 {
    %c0_i32 = arith.constant 0 : i32
    %c0_i32_0 = arith.constant 0 : i32
    return %c0_i32 : i32
  }
  func.func @transform_2(%arg0: i32, %arg1: i32) -> (i32, i32, i32, i32) {
    %c0_i32 = arith.constant 0 : i32
    %c0_i32_0 = arith.constant 0 : i32
    %c0_i32_1 = arith.constant 0 : i32
    return %arg0, %c0_i32, %arg1, %c0_i32_0 : i32, i32, i32, i32
  }
  func.func @transform_3(%arg0: i32, %arg1: i32) -> (i32, i32, i32, i32) {
    %c0_i32 = arith.constant 0 : i32
    %c0_i32_0 = arith.constant 0 : i32
    %c0_i32_1 = arith.constant 0 : i32
    return %arg0, %c0_i32, %arg1, %c0_i32_0 : i32, i32, i32, i32
  }
}

</mosaic_0001>

<bundles_post_ra>
// kernel: tpu_custom_call.1
= control target key start
LH: loop header
LB: loop body
LE: loop exit
PB: predicated region body
PF: predicated region fallthrough
CT: control target
= control target key end

     0   :  { %s928_s0 = inlined_call_operand.hbm [shape: f32[12], index: 0, kind: input, shape index: {}]   ;;  %s929_s1 = inlined_call_operand.hbm [shape: f32[3], index: 1, kind: input, shape index: {}]   ;;  %s930_s2 = inlined_call_operand.hbm [shape: f32[2,4,2,128], index: 2, kind: input, shape index: {}]   ;;  %s931_s3 = inlined_call_operand.hbm [shape: f32[2,3,2,128], index: 3, kind: output, shape index: {}]  }
   0x1   :  { %932 = sst [smem:[#allocation14_spill]] %s928_s0 }
   0x2   :  { %8 = vsyncpa [#allocation5], 0 }
   0x3   :  { %9 = vsyncpa [#allocation7], 0 }
   0x4   :  { %10 = vsyncpa [#allocation3], 0 }
   0x5   :  { %12 = vsyncpa [#allocation3 + $0x1], 0 }
   0x6   :  { %13 = vsyncpa [#allocation4], 0 }
   0x7   :  { %15 = vsyncpa [#allocation4 + $0x1], 0  ;;  %s749_s12 = smov 0   ;;  %s751_s13 = smov 0  }
   0x8   :  { %s753_s14 = smov 0   ;;  %s755_s15 = smov 0  }
   0x9   :  { %s757_s16 = smov 0   ;;  %s759_s17 = smov 0  }
   0xa LB: > { %s441_s18 = sadd.s32 4294967295, %s721_s17   ;;  %s442_s19 = sadd.s32 4294967294, %s721_s17   ;;  %s721_s17 = sphi %s759_s17, %s21_s17   ;;  %s717_s16 = sphi %s757_s16, %s945_s16   ;;  %s713_s15 = sphi %s755_s15, %s944_s15   ;;  %s709_s14 = sphi %s753_s14, %s943_s14   ;;  %s705_s13 = sphi %s751_s13, %s942_s13   ;;  %s701_s12 = sphi %s749_s12, %s941_s12  }
   0xb   : > { %s84_s20 = sadd.s32 1, %s709_s14  ;;  %p91_p0 = scmp.ne.s32.totalorder %s709_s14, %s705_s13 }
   0xc   : > { %p92_p1 = scmp.eq.s32.totalorder %s721_s17, 0  ;;  %p97_p2 = scmp.ne.s32.totalorder %s705_s13, %s701_s12 }
   0xd   : > { %p787_p3 = scmp.eq.s32.totalorder %s441_s18, 0  ;;  %p123_p4 = scmp.eq.s32.totalorder %s441_s18, 1 }
   0xe   : > { %p791_p5 = por %p92_p1, %p91_p0  ;;  %p129_p6 = scmp.eq.s32.totalorder %s442_s19, 1 }
   0xf   : > { %p797_p7 = por %p787_p3, %p97_p2  ;;  %p801_p8 = por %p123_p4, %p91_p0 }
  0x10   : > { %p805_p9 = por %p129_p6, %p97_p2  ;;  %p443_p10 = scmp.ge.s32.totalorder %s721_s17, 1 }
  0x11   : > { %p136_p11 = scmp.lt.s32.totalorder %s721_s17, 3  ;;  %s938_s0 = sld [smem:[#allocation14_spill]] }
  0x12   : > { %p446_p13 = scmp.ge.s32.totalorder %s721_s17, 2  ;;  %p513_p0 = scmp.lt.s32.totalorder %s721_s17, 2 }
  0x13   : > { %p814_p12 = pnand %p443_p10, %p136_p11  ;;  %s158_s5 = sshll.u32 %s929_s1, 4  ;;  %s159_s5 = int_to_ptr.hbm [resolvable:$true] %s158_s5 }
  0x14   : > { %p827_p2 = pnand %p513_p0, %p791_p5  ;;  %s723_s7 = smov [#allocation2]  }
  0x15   : > { %p496_p1 = pneg %p814_p12  ;;  %s724_s8 = smov [#allocation6]  }
  0x16   : > { %s33_s9 = sadd.s32 1, %s717_s16  ;;  %s169_s10 = sand.u32 1, %s709_s14  }
  0x17   : > { %s148_s28 = sshll.u32 %s938_s0, 4  ;;  %p497_p4 = pnand %p496_p1, %p787_p3  ;;  %s149_s28 = int_to_ptr.hbm [resolvable:$true] %s148_s28 }
  0x18   : > { %p35_p6 = scmp.ge.s32.totalorder %s33_s9, 2  ;;  %s447_s11 = sshll.u32 %s169_s10, 3 }
  0x19   : > { %499 = dma.hbm_to_smem (!%p497_p4), %s149_s28, 16, %s723_s7, [#allocation5]  }
  0x1a   : > { %502 = dma.hbm_to_smem (!%p497_p4), %s159_s5, 16, %s724_s8, [#allocation7]  }
  0x1b   : > { %s481_s18 = sshll.u32 %s717_s16, 3  ;;  %s947_s9 = smov (%p35_p6, %s33_s9), 0 }
  0x1c   : > { %s179_s26 = scalar_lea.hbm %s930_s2, %s481_s18  ;;  %s79_s27 = ssub.s32 %s717_s16, %s947_s9 }
  0x1d   : > { %s180_s30 = sshll.u32 %s179_s26, 4  ;;  %p82_p5 = scmp.eq.s32.totalorder %s79_s27, 0  ;;  %s181_s30 = int_to_ptr.hbm [resolvable:$true] %s180_s30 }
  0x1e   : > { %s173_s28 = scalar_lea.vmem [#allocation8], %s447_s11  ;;  %s170_s7 = scalar_lea.sflag [#allocation3], %s169_s10 }
  0x1f   : > { %s182_s4 = sshll.u32 %s173_s28, 4  ;;  %s725_s8 = smov 32   ;;  %s183_s4 = int_to_ptr.vmem [resolvable:$true] %s182_s4 }
  0x20   : > { %s846_s5 = scalar_select %p82_p5, %s709_s14, %s84_s20  }
  0x21   : > { %s726_s0 = smov 2   ;;  %194 = sbr.rel (%p814_p12) target bundleno = 79 (0x4f), region = 32 }
  0x22   : > { %506 = dma.hbm_to_vmem [thread:$0]  (!%p827_p2), %s181_s30, 128, %s183_s4, %s170_s7, %s725_s8, %s725_s8, %s726_s0  }
  0x26   : > { %684 = dma.done.wait (%p787_p3), [#allocation5], 16  }
  0x27   : > { %686 = vsyncadd (%p787_p3), [#allocation5], 4294967280 }
  0x28   : > { %688 = dma.done.wait (%p787_p3), [#allocation7], 16  }
  0x29   : > { %690 = vsyncadd (%p787_p3), [#allocation7], 4294967280  ;;  %s861_s20 = sand.u32 1, %s705_s13  }
  0x2a   : > { %s453_s0 = sshll.u32 %s861_s20, 3  ;;  %s207_s29 = scalar_lea.sflag [#allocation3], %s861_s20 }
  0x2b   : > { %s865_s6 = scalar_lea.vmem [#allocation8], %s453_s0 }
  0x2c   : > { %692 = dma.done.wait (%p797_p7), %s207_s29, 128  }
  0x2d   : > { %694 = vsyncadd (%p797_p7), %s207_s29, 4294967168 }
  0x2e   : > { %216 = sfence }
  0x2f   : > { %s235_s10 = sld [smem:[#allocation2]]  ;;  %v250_v0 = vld [vmem:[%s865_s6] sm:$0x3]  ;;  %v467_v1 = vld [vmem:[%s865_s6 + $0x2] sm:$0x3]  ;;  %s482_s4 = smul.u32 6, %s861_s20 }
  0x30   : > { %s454_s21 = sld [smem:[#allocation2 + $0x1]]  ;;  %v468_v3 = vld [vmem:[%s865_s6 + $0x4] sm:$0x3]  ;;  %v469_v6 = vld [vmem:[%s865_s6 + $0x6] sm:$0x3] }
  0x31   : > { %s455_s11 = sld [smem:[#allocation2 + $0x2]]  ;;  %v274_v11 = vld [vmem:[%s865_s6] sm:$0x3]  ;;  %v470_v14 = vld [vmem:[%s865_s6 + $0x2] sm:$0x3] }
  0x32   : > { %s456_s18 = sld [smem:[#allocation2 + $0x3]]  ;;  %v471_v16 = vld [vmem:[%s865_s6 + $0x4] sm:$0x3]  ;;  %v472_v20 = vld [vmem:[%s865_s6 + $0x6] sm:$0x3] }
  0x33   : > { %s871_s19 = sld [smem:[#allocation6]]  ;;  %v293_v27 = vld [vmem:[%s865_s6] sm:$0x3]  ;;  %v474_v30 = vld [vmem:[%s865_s6 + $0x2] sm:$0x3] }
  0x34   : > { %s457_s22 = sld [smem:[#allocation2 + $0x4]]  ;;  %v475_v33 = vld [vmem:[%s865_s6 + $0x4] sm:$0x3]  ;;  %v476_v37 = vld [vmem:[%s865_s6 + $0x6] sm:$0x3] }
  0x35   : > { %v251_v2 = vstv %s235_s10  ;;  %s458_s23 = sld [smem:[#allocation2 + $0x5]]  ;;  %s483_s10 = smul.u32 6, %s713_s15 }
  0x36   : > { %v252_v4 = vmul.f32 %v251_v2, %v250_v0  ;;  %v256_v5 = vstv %s454_s21  ;;  %s459_s26 = sld [smem:[#allocation2 + $0x6]]  ;;  %s234_s21 = scalar_lea.vmem [#allocation9], %s482_s4 }
  0x37   : > { %v257_v7 = vmul.f32 %v467_v1, %v256_v5  ;;  %v262_v8 = vstv %s455_s11  ;;  %s460_s27 = sld [smem:[#allocation2 + $0x7]]  ;;  %s326_s15 = sshll.u32 %s234_s21, 4  ;;  %s327_s15 = int_to_ptr.vmem [resolvable:$true] %s326_s15 }
  0x38   : > { %v263_v9 = vmul.f32 %v468_v3, %v262_v8  ;;  %v268_v10 = vstv %s456_s18  ;;  %s877_s30 = sld [smem:[#allocation6 + $0x1]] }
  0x39   : > { %v258_v12 = vadd.f32 %v257_v7, %v252_v4  ;;  %v269_v13 = vmul.f32 %v469_v6, %v268_v10  ;;  %s461_s28 = sld [smem:[#allocation2 + $0x8]]  ;;  %v271_v21 = vstv %s871_s19  ;;  %s325_s19 = scalar_lea.hbm %s931_s3, %s483_s10 }
  0x3a   : > { %v275_v15 = vstv %s457_s22  ;;  %s462_s7 = sld [smem:[#allocation2 + $0x9]]  ;;  %s328_s6 = sshll.u32 %s325_s19, 4  ;;  %s329_s6 = int_to_ptr.hbm [resolvable:$true] %s328_s6 }
  0x3b   : > { %v264_v17 = vadd.f32 %v263_v9, %v258_v12  ;;  %v276_v18 = vmul.f32 %v275_v15, %v274_v11  ;;  %v278_v19 = vstv %s458_s23  ;;  %s463_s8 = sld [smem:[#allocation2 + $0xa]]  ;;  %s313_s22 = scalar_lea.sflag [#allocation4], %s861_s20 }
  0x3c   : > { %v279_v22 = vmul.f32 %v470_v14, %v278_v19  ;;  %v282_v23 = vstv %s459_s26  ;;  %s464_s0 = sld [smem:[#allocation2 + $0xb]]  ;;  %s645_s23 = sshra.s32 %s329_s6, 4  ;;  %s646_s23 = int_to_ptr.hbm [resolvable:$true] %s645_s23 }
  0x3d   : > { %v270_v24 = vadd.f32 %v269_v13, %v264_v17  ;;  %v283_v25 = vmul.f32 %v471_v16, %v282_v23  ;;  %v286_v26 = vstv %s460_s27  ;;  %s466_s29 = sld [smem:[#allocation6 + $0x2]]  ;;  %s647_s26 = scalar_lea.hbm %s646_s23, 6 }
  0x3e   : > { %v280_v28 = vadd.f32 %v279_v22, %v276_v18  ;;  %v287_v29 = vmul.f32 %v472_v20, %v286_v26  ;;  %v289_v38 = vstv %s877_s30  ;;  %p648_p3 = scmp.ne.s32.totalorder %s646_s23, %s647_s26  ;;  %p652_p11 = scmp.lt.s32.totalorder %s646_s23, %s931_s3 }
  0x3f   : > { %v272_v31 = vadd.f32 %v271_v21, %v270_v24  ;;  %v294_v32 = vstv %s461_s28  ;;  %s651_s28 = scalar_lea.hbm %s931_s3, 12 }
  0x40   : > { %v284_v34 = vadd.f32 %v283_v25, %v280_v28  ;;  %v295_v35 = vmul.f32 %v294_v32, %v293_v27  ;;  %v297_v36 = vstv %s462_s7  ;;  %p649_p7 = pnand %p648_p3, %p801_p8  ;;  %p653_p12 = scmp.lt.s32.totalorder %s651_s28, %s647_s26 }
  0x41   : > { %273 = vst [vmem:[%s234_s21] sm:$0x3] %v272_v31  ;;  %v298_v39 = vmul.f32 %v474_v30, %v297_v36  ;;  %v301_v40 = vstv %s463_s8 }
  0x42   : > { %v288_v41 = vadd.f32 %v287_v29, %v284_v34  ;;  %v302_v42 = vmul.f32 %v475_v33, %v301_v40  ;;  %v305_v43 = vstv %s464_s0  ;;  %p650_p10 = pneg %p649_p7  ;;  %p654_p0 = por %p653_p12, %p652_p11 }
  0x43   : > { %v299_v44 = vadd.f32 %v298_v39, %v295_v35  ;;  %v306_v45 = vmul.f32 %v476_v37, %v305_v43  ;;  %v308_v48 = vstv %s466_s29 }
  0x44   : > { %v290_v46 = vadd.f32 %v289_v38, %v288_v41  ;;  %p655_p1 = pnand %p654_p0, %p650_p10 }
  0x45   : > { %v303_v47 = vadd.f32 %v302_v42, %v299_v44 }
  0x46   : > { %473 = vst [vmem:[%s234_s21 + $0x2] sm:$0x3] %v290_v46 }
  0x47   : > { %v307_v49 = vadd.f32 %v306_v45, %v303_v47 }
  0x49   : > { %v309_v50 = vadd.f32 %v308_v48, %v307_v49 }
  0x4b   : > { %477 = vst [vmem:[%s234_s21 + $0x4] sm:$0x3] %v309_v50 }
  0x4c   : > { %658 = shalt.err (!%p655_p1)
}
  0x4d   : > { %s727_s20 = smov 32   ;;  %s728_s8 = smov 2  }
  0x4e   : > { %494 = dma.vmem_to_hbm [thread:$0]  (%p801_p8), %s327_s15, 96, %s329_s6, %s313_s22, %s727_s20, %s727_s20, %s728_s8  }
  0x4f PF: > { %s343_s0 = sand.u32 1, %s701_s12   ;;  %p508_p2 = pnand %p446_p13, %p805_p9 }
  0x50   : > { %s344_s29 = scalar_lea.sflag [#allocation4], %s343_s0 }
  0x51   : > { %p509_p4 = pneg %p508_p2 }
  0x53   : > { %696 = dma.done.wait (%p509_p4), %s344_s29, 96  }
  0x54   : > { %698 = vsyncadd (%p509_p4), %s344_s29, 4294967200  ;;  %s21_s17 = sadd.s32 1, %s721_s17   ;;  %s941_s12 = smov %s705_s13 }
  0x55   : > { %p18_p6 = scmp.ge.s32.totalorder %s21_s17, 4   ;;  %s942_s13 = smov %s709_s14 }
  0x56   : > { %s943_s14 = smov %s846_s5  ;;  %s944_s15 = smov %s717_s16 }
  0x57   : > { %s945_s16 = smov %s947_s9  ;;  %20 = sbr.rel (!%p18_p6) target bundleno = 10 (0xa), region = 91 }
  0x5c   :  { %350 = vsyncpa [#allocation3], 1 }
  0x5d   :  { %352 = vsyncpa [#allocation3 + $0x1], 1 }
  0x5e   :  { %353 = vsyncpa [#allocation4], 1 }
  0x5f   :  { %355 = vsyncpa [#allocation4 + $0x1], 1 }
  0x60   :  { %356 = vsyncpa [#allocation5], 1 }
  0x61   :  { %358 = vsyncpa [#allocation5 + $0x1], 1 }
  0x62   :  { %359 = vsyncpa [#allocation7], 1 }

</bundles_post_ra>
